<compile_context>
chip_gen: v7x
topology: tpu7x:2x2x1
jax: 0.10.0
libtpu: 0.0.40
codegen_flags: <defaults>
</compile_context>

<pallas_src>
import jax
import jax.numpy as jnp
import numpy as np
from jax.experimental import pallas as pl
from jax.experimental.pallas import tpu as pltpu

MODEL_NAMES = [
    'nin_cifar10', 'resnet542bn_cifar10', 'resnet1202_cifar10',
    'preresnet542bn_cifar10', 'preresnet1202_cifar10',
    'resnext29_32x4d_cifar10', 'resnext272_2x32d_cifar10',
    'seresnet110_cifar10', 'seresnet542bn_cifar10',
    'sepreresnet110_cifar10', 'sepreresnet542bn_cifar10',
    'pyramidnet164_a270_bn_cifar10', 'pyramidnet272_a200_bn_cifar10',
    'densenet190_k40_bc_cifar10', 'densenet250_k24_bc_cifar10',
    'xdensenet40_2_k36_bc_cifar10', 'wrn20_10_32bit_cifar10',
    'wrn40_8_cifar10', 'ror3_164_cifar10', 'rir_cifar10',
    'shakeshakeresnet26_2x32d_cifar10', 'diaresnet110_cifar10',
    'diaresnet164bn_cifar10', 'diapreresnet110_cifar10',
    'diapreresnet164bn_cifar10',
]
NUM_MODELS = len(MODEL_NAMES)   # 25
NUM_CLASSES = 10                # CIFAR-10 logits

N_PAD = 256     # M*C = 250 padded up to a multiple of 128 (lane-dense, v5e-clean)
OUT_PAD = 128   # lane-dense padded output width; wrapper slices back to 10


def _ensemble_kernel(x_ref, w_ref, r_ref, b_ref, o_ref):
    """Single-step kernel: whole ensemble in two lane-dense MXU calls.

    x_ref : (B, D)          flattened input
    w_ref : (D, N_PAD)      all 25 members' classifier weights, side by side
    r_ref : (N_PAD, OUT_PAD) static group-sum matrix with 1/M entries
    b_ref : (1, OUT_PAD)    pre-folded ensemble bias (sum_i b_i / M), padded
    o_ref : (B, OUT_PAD)    padded ensemble logits (cols >= 10 are zero)
    """
    # One MXU call computes every member's logits (lane-dense N=256).
    logits_all = jnp.dot(x_ref[...], w_ref[...],
                         preferred_element_type=jnp.float32)      # (B, N_PAD)
    # Second MXU call performs the per-member /M average (group-sum over the
    # 25 ten-wide column groups) without any in-kernel reshape.
    ens = jnp.dot(logits_all, r_ref[...],
                  preferred_element_type=jnp.float32)             # (B, OUT_PAD)
    o_ref[...] = (ens + b_ref[...]).astype(o_ref.dtype)


def ensemble_forward(x_nchw, weights, biases):
    """x_nchw: (B, C, H, W) f32; weights: (M, D, C); biases: (M, 1, C)."""
    B = x_nchw.shape[0]
    D = x_nchw.shape[1] * x_nchw.shape[2] * x_nchw.shape[3]
    x_flat = x_nchw.reshape(B, D)

    # --- static data prep in the wrapper (layout plumbing, not compute) ----
    # (M, D, C) -> (D, M*C) slab, zero-padded to (D, 256): lane-dense weights.
    w_slab = jnp.transpose(weights, (1, 0, 2)).reshape(D, NUM_MODELS * NUM_CLASSES)
    w_slab = jnp.pad(w_slab, ((0, 0), (0, N_PAD - NUM_MODELS * NUM_CLASSES)))

    # Group-sum matrix folding the ensemble average: R[m*C + c, c] = 1/M.
    r_np = np.zeros((N_PAD, OUT_PAD), dtype=np.float32)
    for m in range(NUM_MODELS):
        for c in range(NUM_CLASSES):
            r_np[m * NUM_CLASSES + c, c] = 1.0 / NUM_MODELS
    r_mat = jnp.asarray(r_np)

    # Fold all biases once: sum_i b_i / M, padded to OUT_PAD lanes.
    b_avg = biases[:, 0, :].sum(axis=0) / float(NUM_MODELS)        # (C,)
    b_row = jnp.zeros((1, OUT_PAD), jnp.float32).at[0, :NUM_CLASSES].set(b_avg)

    grid_spec = pltpu.PrefetchScalarGridSpec(
        num_scalar_prefetch=0,
        grid=(1,),   # everything (x ~8 KiB, W ~1 MiB, R 128 KiB) fits VMEM
        in_specs=[
            pl.BlockSpec((B, D), lambda i: (0, 0)),
            pl.BlockSpec((D, N_PAD), lambda i: (0, 0)),
            pl.BlockSpec((N_PAD, OUT_PAD), lambda i: (0, 0)),
            pl.BlockSpec((1, OUT_PAD), lambda i: (0, 0)),
        ],
        out_specs=pl.BlockSpec((B, OUT_PAD), lambda i: (0, 0)),
    )

    out_padded = pl.pallas_call(
        _ensemble_kernel,
        out_shape=jax.ShapeDtypeStruct((B, OUT_PAD), x_nchw.dtype),
        grid_spec=grid_spec,
        compiler_params=pltpu.CompilerParams(
            dimension_semantics=("arbitrary",)),
    )(x_flat, w_slab, r_mat, b_row)

    # Slice the lane-padded output back to the 10 CIFAR-10 classes.
    return out_padded[:, :NUM_CLASSES]


def ensemble_reference(x_nchw, weights, biases):
    """Pure-JAX reference replicating ensembleNet.forward semantics."""
    B = x_nchw.shape[0]
    x_flat = x_nchw.reshape(B, -1)
    out = None
    for i in range(NUM_MODELS):
        logits = x_flat @ weights[i] + biases[i, 0]
        term = logits / float(NUM_MODELS)
        out = term if out is None else out + term
    return out


if __name__ == "__main__":
    key = jax.random.PRNGKey(0)
    kx, kw, kb = jax.random.split(key, 3)

    # Small shapes consistent with an image-classifier ensemble:
    B, C, H, W = 2, 4, 16, 16
    D = C * H * W

    x = jax.random.normal(kx, (B, C, H, W), dtype=jnp.float32)
    # Deterministic synthetic per-model classifier parameters.
    weights = jax.random.normal(kw, (NUM_MODELS, D, NUM_CLASSES),
                                dtype=jnp.float32) * 0.05
    biases = jax.random.normal(kb, (NUM_MODELS, 1, NUM_CLASSES),
                               dtype=jnp.float32) * 0.05

    out = ensemble_forward(x, weights, biases)
    out = jax.block_until_ready(out)

    ref = ensemble_reference(x, weights, biases)
    assert out.shape == (B, NUM_CLASSES), out.shape
    assert jnp.allclose(out, ref, atol=1e-4, rtol=1e-4), \
        f"max abs err {jnp.max(jnp.abs(out - ref))}"

    print("KERNEL_OK")
</pallas_src>

<mosaic_0001>
module attributes {stable_mosaic.version = 11 : i64} {
  func.func @_ensemble_kernel(%arg0: i32, %arg1: memref<2x1024xf32, #tpu.memory_space<vmem>>, %arg2: memref<1024x256xf32, #tpu.memory_space<vmem>>, %arg3: memref<256x128xf32, #tpu.memory_space<vmem>>, %arg4: memref<1x128xf32, #tpu.memory_space<vmem>>, %arg5: memref<2x128xf32, #tpu.memory_space<vmem>>) attributes {dimension_semantics = [#tpu.dimension_semantics<arbitrary>], iteration_bounds = array<i64: 1>, scalar_prefetch = 0 : i64, scratch_operands = 0 : i64, tpu.core_type = #tpu.core_type<tc>, window_params = [{pipeline_mode = #tpu.pipeline_mode<synchronous>, transform_indices = @transform_0, window_bounds = array<i64: 2, 1024>}, {pipeline_mode = #tpu.pipeline_mode<synchronous>, transform_indices = @transform_1, window_bounds = array<i64: 1024, 256>}, {pipeline_mode = #tpu.pipeline_mode<synchronous>, transform_indices = @transform_2, window_bounds = array<i64: 256, 128>}, {pipeline_mode = #tpu.pipeline_mode<synchronous>, transform_indices = @transform_3, window_bounds = array<i64: 1, 128>}, {pipeline_mode = #tpu.pipeline_mode<synchronous>, transform_indices = @transform_4, window_bounds = array<i64: 2, 128>}]} {
    %c0 = arith.constant 0 : index
    %c0_0 = arith.constant 0 : index
    %0 = vector.load %arg1[%c0, %c0_0] : memref<2x1024xf32, #tpu.memory_space<vmem>>, vector<2x1024xf32>
    %c0_1 = arith.constant 0 : index
    %c0_2 = arith.constant 0 : index
    %1 = vector.load %arg2[%c0_1, %c0_2] : memref<1024x256xf32, #tpu.memory_space<vmem>>, vector<1024x256xf32>
    %cst = arith.constant dense<0.000000e+00> : vector<2x256xf32>
    %2 = tpu.matmul %0, %1, %cst {dimension_numbers = #tpu.dot_dimension_numbers<[1], [0], [0], [1], [0, 0, 1, 1], [], []>} : vector<2x1024xf32>, vector<1024x256xf32>, vector<2x256xf32> -> vector<2x256xf32>
    %c0_3 = arith.constant 0 : index
    %c0_4 = arith.constant 0 : index
    %3 = vector.load %arg3[%c0_3, %c0_4] : memref<256x128xf32, #tpu.memory_space<vmem>>, vector<256x128xf32>
    %cst_5 = arith.constant dense<0.000000e+00> : vector<2x128xf32>
    %4 = tpu.matmul %2, %3, %cst_5 {dimension_numbers = #tpu.dot_dimension_numbers<[1], [0], [0], [1], [0, 0, 1, 1], [], []>} : vector<2x256xf32>, vector<256x128xf32>, vector<2x128xf32> -> vector<2x128xf32>
    %c0_6 = arith.constant 0 : index
    %c0_7 = arith.constant 0 : index
    %5 = vector.load %arg4[%c0_6, %c0_7] : memref<1x128xf32, #tpu.memory_space<vmem>>, vector<1x128xf32>
    %6 = vector.broadcast %5 : vector<1x128xf32> to vector<2x128xf32>
    %7 = arith.addf %4, %6 : vector<2x128xf32>
    %c0_8 = arith.constant 0 : index
    %c0_9 = arith.constant 0 : index
    %8 = vector.load %arg5[%c0_8, %c0_9] : memref<2x128xf32, #tpu.memory_space<vmem>>, vector<2x128xf32>
    tpu.vector_store %arg5[%c0_8, %c0_9], %7 {strides = array<i32>} : memref<2x128xf32, #tpu.memory_space<vmem>>, vector<2x128xf32>,
    return
  }
  func.func @transform_0(%arg0: i32) -> (i32, i32) {
    %c0_i32 = arith.constant 0 : i32
    %c0_i32_0 = arith.constant 0 : i32
    %c0_i32_1 = arith.constant 0 : i32
    return %c0_i32, %c0_i32_0 : i32, i32
  }
  func.func @transform_1(%arg0: i32) -> (i32, i32) {
    %c0_i32 = arith.constant 0 : i32
    %c0_i32_0 = arith.constant 0 : i32
    %c0_i32_1 = arith.constant 0 : i32
    return %c0_i32, %c0_i32_0 : i32, i32
  }
  func.func @transform_2(%arg0: i32) -> (i32, i32) {
    %c0_i32 = arith.constant 0 : i32
    %c0_i32_0 = arith.constant 0 : i32
    %c0_i32_1 = arith.constant 0 : i32
    return %c0_i32, %c0_i32_0 : i32, i32
  }
  func.func @transform_3(%arg0: i32) -> (i32, i32) {
    %c0_i32 = arith.constant 0 : i32
    %c0_i32_0 = arith.constant 0 : i32
    %c0_i32_1 = arith.constant 0 : i32
    return %c0_i32, %c0_i32_0 : i32, i32
  }
  func.func @transform_4(%arg0: i32) -> (i32, i32) {
    %c0_i32 = arith.constant 0 : i32
    %c0_i32_0 = arith.constant 0 : i32
    %c0_i32_1 = arith.constant 0 : i32
    return %c0_i32, %c0_i32_0 : i32, i32
  }
}

</mosaic_0001>

<bundles_post_ra>
// kernel: tpu_custom_call.1
= control target key start
LH: loop header
LB: loop body
LE: loop exit
PB: predicated region body
PF: predicated region fallthrough
CT: control target
= control target key end

     0   :  { %9 = vsyncpa [#allocation3], 0  ;;  %s1325_s0 = inlined_call_operand.hbm [shape: f32[2,1024], index: 0, kind: input, shape index: {}]   ;;  %s1326_s1 = inlined_call_operand.hbm [shape: f32[1024,256], index: 1, kind: input, shape index: {}]   ;;  %s1327_s2 = inlined_call_operand.hbm [shape: f32[256,128], index: 2, kind: input, shape index: {}]   ;;  %s1328_s3 = inlined_call_operand.vmem [shape: f32[1,128], index: 3, kind: input, shape index: {}]   ;;  %s1329_s4 = inlined_call_operand.hbm [shape: f32[2,128], index: 4, kind: output, shape index: {}]  }
   0x1   :  { %10 = vsyncpa [#allocation6], 0 }
   0x2   :  { %11 = vsyncpa [#allocation4], 0  ;;  %s1204_s15 = smov [#allocation5]   ;;  %s1110_s19 = scalar_lea.hbm %s1326_s1, 32768 }
   0x3   :  { %s27_s16 = sshll.u32 %s1204_s15, 4  ;;  %p1111_p0 = scmp.ne.s32.totalorder %s1326_s1, %s1110_s19  ;;  %s28_s16 = int_to_ptr.vmem [resolvable:$true] %s27_s16 }
   0x4   :  { %p1114_p1 = scmp.lt.u32.totalorder %s1110_s19, %s1326_s1 }
   0x6   :  { %p1116_p2 = pnand %p1114_p1, %p1111_p0 }
   0x8   :  { %1119 = shalt.err (!%p1116_p2)
}
   0x9   :  { %s1120_s24 = scalar_lea.vmem %s28_s16, 32768  ;;  %p1125_p4 = scmp.lt.s32.totalorder %s28_s16, %s28_s16 }
   0xa   :  { %p1121_p3 = scmp.ne.s32.totalorder %s28_s16, %s1120_s24  ;;  %p1126_p5 = scmp.lt.s32.totalorder %s1120_s24, %s1120_s24 }
   0xc   :  { %p1127_p6 = por %p1126_p5, %p1125_p4 }
   0xe   :  { %p1128_p7 = pnand %p1127_p6, %p1121_p3 }
  0x10   :  { %1131 = shalt.err (!%p1128_p7)
}
  0x11   :  { %s1205_s25 = smov 256   ;;  %s1206_s26 = smov 16  }
  0x12   :  { %33 = dma.hbm_to_vmem [thread:$0]  %s1326_s1, 32768, %s28_s16, [#allocation6], %s1205_s25, %s1205_s25, %s1206_s26  }
  0x13   :  { %s1207_s29 = smov [#allocation2]   ;;  %s1208_s5 = smov [#allocation7]  }
  0x14   :  { %s18_s30 = sshll.u32 %s1207_s29, 4  ;;  %s39_s6 = sshll.u32 %s1208_s5, 4  ;;  %s19_s30 = int_to_ptr.vmem [resolvable:$true] %s18_s30  ;;  %s40_s6 = int_to_ptr.vmem [resolvable:$true] %s39_s6 }
  0x15   :  { %s1132_s9 = scalar_lea.hbm %s1325_s0, 256 }
  0x16   :  { %p1133_p8 = scmp.ne.s32.totalorder %s1325_s0, %s1132_s9  ;;  %p1136_p9 = scmp.lt.u32.totalorder %s1132_s9, %s1325_s0 }
  0x18   :  { %p1138_p10 = pnand %p1136_p9, %p1133_p8 }
  0x1a   :  { %1141 = shalt.err (!%p1138_p10)
}
  0x1b   :  { %s1142_s1 = scalar_lea.vmem %s19_s30, 256  ;;  %p1147_p12 = scmp.lt.s32.totalorder %s19_s30, %s19_s30 }
  0x1c   :  { %p1143_p11 = scmp.ne.s32.totalorder %s19_s30, %s1142_s1  ;;  %p1148_p13 = scmp.lt.s32.totalorder %s1142_s1, %s1142_s1 }
  0x1e   :  { %p1149_p0 = por %p1148_p13, %p1147_p12 }
  0x20   :  { %p1150_p1 = pnand %p1149_p0, %p1143_p11 }
  0x22   :  { %1153 = shalt.err (!%p1150_p1)
}
  0x23   :  { %21 = dma.hbm_to_vmem [thread:$0]  %s1325_s0, 256, %s19_s30, [#allocation3]  }
  0x24   :  { %s1154_s18 = scalar_lea.hbm %s1327_s2, 4096 }
  0x25   :  { %p1155_p2 = scmp.ne.s32.totalorder %s1327_s2, %s1154_s18  ;;  %p1158_p3 = scmp.lt.u32.totalorder %s1154_s18, %s1327_s2 }
  0x27   :  { %p1160_p4 = pnand %p1158_p3, %p1155_p2 }
  0x29   :  { %1163 = shalt.err (!%p1160_p4)
}
  0x2a   :  { %s1164_s23 = scalar_lea.vmem %s40_s6, 4096  ;;  %p1169_p6 = scmp.lt.s32.totalorder %s40_s6, %s40_s6 }
  0x2b   :  { %p1165_p5 = scmp.ne.s32.totalorder %s40_s6, %s1164_s23  ;;  %p1170_p7 = scmp.lt.s32.totalorder %s1164_s23, %s1164_s23 }
  0x2d   :  { %p1171_p8 = por %p1170_p7, %p1169_p6 }
  0x2f   :  { %p1172_p9 = pnand %p1171_p8, %p1165_p5 }
  0x31   :  { %1175 = shalt.err (!%p1172_p9)
}
  0x32   :  { %s1209_s0 = smov 128   ;;  %s1210_s24 = smov 8  }
  0x33   :  { %45 = dma.hbm_to_vmem [thread:$0]  %s1327_s2, 4096, %s40_s6, [#allocation6], %s1209_s0, %s1209_s0, %s1210_s24  }
  0x34   :  { %1198 = dma.done.wait [#allocation3], 256  }
  0x35   :  { %1199 = vsyncadd [#allocation3], 4294967040 }
  0x36   :  { %1200 = dma.done.wait [#allocation6], 36864  }
  0x37   :  { %1201 = vsyncadd [#allocation6], 4294930432  ;;  %v60_v0 = vld [vmem:[#allocation5 + $0x8] sm:$0xff]  ;;  %v62_v1 = vld [vmem:[#allocation5 + $0x18] sm:$0xff]  ;;  %s1212_s28 = smov [#allocation8]  }
  0x38   :  { %v188_v2 = vld [vmem:[#allocation5 + $0x408] sm:$0xff]  ;;  %v805_v3 = vpack.c.bf16 %v62_v1, %v60_v0  ;;  %v190_v4 = vld [vmem:[#allocation5 + $0x418] sm:$0xff]  ;;  %v59_v5 = vld [vmem:[#allocation5] sm:$0xff]  ;;  %s759_s29 = sshll.u32 %s1212_s28, 4  ;;  %s760_s29 = int_to_ptr.vmem [resolvable:$true] %s759_s29 }
  0x39   :  { %v61_v6 = vld [vmem:[#allocation5 + $0x10] sm:$0xff]  ;;  %v933_v7 = vpack.c.bf16 %v190_v4, %v188_v2  ;;  %v187_v9 = vld [vmem:[#allocation5 + $0x400] sm:$0xff]  ;;  %v64_v11 = vld [vmem:[#allocation5 + $0x28] sm:$0xff]  ;;  %s1176_s30 = scalar_lea.vmem %s760_s29, 32  ;;  %p1181_p11 = scmp.lt.s32.totalorder %s760_s29, %s760_s29 }
  0x3a   :  { %v807_v8 = vpack.c.bf16 %v61_v6, %v59_v5  ;;  %v189_v10 = vld [vmem:[#allocation5 + $0x410] sm:$0xff]  ;;  %806 = vmatprep.subr.bf16.mxu1 %v805_v3  ;;  %v66_v13 = vld [vmem:[#allocation5 + $0x38] sm:$0xff]  ;;  %v192_v14 = vld [vmem:[#allocation5 + $0x428] sm:$0xff]  ;;  %p1177_p10 = scmp.ne.s32.totalorder %s760_s29, %s1176_s30  ;;  %p1182_p12 = scmp.lt.s32.totalorder %s1176_s30, %s1176_s30 }
  0x3b   :  { %v935_v12 = vpack.c.bf16 %v189_v10, %v187_v9  ;;  %v194_v15 = vld [vmem:[#allocation5 + $0x438] sm:$0xff]  ;;  %934 = vmatprep.subr.bf16.mxu0 %v933_v7  ;;  %v809_v16 = vpack.c.bf16 %v66_v13, %v64_v11  ;;  %v63_v18 = vld [vmem:[#allocation5 + $0x20] sm:$0xff]  ;;  %v65_v19 = vld [vmem:[#allocation5 + $0x30] sm:$0xff] }
  0x3c   :  { %808 = vmatpush1.bf16.msra.mxu1 %v807_v8  ;;  %v937_v17 = vpack.c.bf16 %v194_v15, %v192_v14  ;;  %v191_v20 = vld [vmem:[#allocation5 + $0x420] sm:$0xff]  ;;  %v811_v21 = vpack.c.bf16 %v65_v19, %v63_v18  ;;  %v193_v22 = vld [vmem:[#allocation5 + $0x430] sm:$0xff]  ;;  %v68_v23 = vld [vmem:[#allocation5 + $0x48] sm:$0xff]  ;;  %p1183_p13 = por %p1182_p12, %p1181_p11 }
  0x3d   :  { %936 = vmatpush1.bf16.msra.mxu0 %v935_v12  ;;  %v70_v24 = vld [vmem:[#allocation5 + $0x58] sm:$0xff]  ;;  %810 = vmatprep.subr.bf16.mxu1 %v809_v16  ;;  %v939_v25 = vpack.c.bf16 %v193_v22, %v191_v20  ;;  %v196_v27 = vld [vmem:[#allocation5 + $0x448] sm:$0xff]  ;;  %v67_v29 = vld [vmem:[#allocation5 + $0x40] sm:$0xff] }
  0x3e   :  { %938 = vmatprep.subr.bf16.mxu0 %v937_v17  ;;  %v813_v26 = vpack.c.bf16 %v70_v24, %v68_v23  ;;  %v198_v28 = vld [vmem:[#allocation5 + $0x458] sm:$0xff]  ;;  %v69_v31 = vld [vmem:[#allocation5 + $0x50] sm:$0xff]  ;;  %v195_v32 = vld [vmem:[#allocation5 + $0x440] sm:$0xff]  ;;  %p1184_p0 = pnand %p1183_p13, %p1177_p10 }
  0x3f   :  { %v941_v30 = vpack.c.bf16 %v198_v28, %v196_v27  ;;  %v197_v33 = vld [vmem:[#allocation5 + $0x450] sm:$0xff]  ;;  %v815_v34 = vpack.c.bf16 %v69_v31, %v67_v29  ;;  %v72_v35 = vld [vmem:[#allocation5 + $0x68] sm:$0xff]  ;;  %v74_v36 = vld [vmem:[#allocation5 + $0x78] sm:$0xff] }
  0x40   :  { %812 = vmatpush1.bf16.msra.mxu1 %v811_v21  ;;  %v200_v37 = vld [vmem:[#allocation5 + $0x468] sm:$0xff]  ;;  %v943_v38 = vpack.c.bf16 %v197_v33, %v195_v32  ;;  %v817_v39 = vpack.c.bf16 %v74_v36, %v72_v35  ;;  %v202_v40 = vld [vmem:[#allocation5 + $0x478] sm:$0xff]  ;;  %v71_v41 = vld [vmem:[#allocation5 + $0x60] sm:$0xff] }
  0x41   :  { %940 = vmatpush1.bf16.msra.mxu0 %v939_v25  ;;  %814 = vmatprep.subr.bf16.mxu1 %v813_v26  ;;  %v73_v42 = vld [vmem:[#allocation5 + $0x70] sm:$0xff]  ;;  %v945_v43 = vpack.c.bf16 %v202_v40, %v200_v37  ;;  %v199_v44 = vld [vmem:[#allocation5 + $0x460] sm:$0xff]  ;;  %v76_v46 = vld [vmem:[#allocation5 + $0x88] sm:$0xff] }
  0x42   :  { %942 = vmatprep.subr.bf16.mxu0 %v941_v30  ;;  %v201_v45 = vld [vmem:[#allocation5 + $0x470] sm:$0xff]  ;;  %v78_v47 = vld [vmem:[#allocation5 + $0x98] sm:$0xff]  ;;  %v204_v48 = vld [vmem:[#allocation5 + $0x488] sm:$0xff]  ;;  %v819_v50 = vpack.c.bf16 %v73_v42, %v71_v41 }
  0x43   :  { %v206_v49 = vld [vmem:[#allocation5 + $0x498] sm:$0xff]  ;;  %v947_v51 = vpack.c.bf16 %v201_v45, %v199_v44  ;;  %v821_v52 = vpack.c.bf16 %v78_v47, %v76_v46  ;;  %v75_v53 = vld [vmem:[#allocation5 + $0x80] sm:$0xff]  ;;  %v77_v54 = vld [vmem:[#allocation5 + $0x90] sm:$0xff]  ;;  %v1211_v46 = vmov 1983009808  }
  0x44   :  { %816 = vmatpush1.bf16.msra.mxu1 %v815_v34  ;;  %v203_v55 = vld [vmem:[#allocation5 + $0x480] sm:$0xff]  ;;  %v949_v56 = vpack.c.bf16 %v206_v49, %v204_v48  ;;  %v205_v57 = vld [vmem:[#allocation5 + $0x490] sm:$0xff]  ;;  %v80_v58 = vld [vmem:[#allocation5 + $0xa8] sm:$0xff]  ;;  %v823_v62 = vpack.c.bf16 %v77_v54, %v75_v53  ;;  %v319_v47 = vunpack.c.l.s4 %v1211_v46  ;;  %v321_v48 = vlaneseq }
  0x45   :  { %944 = vmatpush1.bf16.msra.mxu0 %v943_v38  ;;  %818 = vmatprep.subr.bf16.mxu1 %v817_v39  ;;  %v82_v59 = vld [vmem:[#allocation5 + $0xb8] sm:$0xff]  ;;  %v208_v60 = vld [vmem:[#allocation5 + $0x4a8] sm:$0xff]  ;;  %v951_v63 = vpack.c.bf16 %v205_v57, %v203_v55  ;;  %v79_v1 = vld [vmem:[#allocation5 + $0xa0] sm:$0xff] }
  0x46   :  { %946 = vmatprep.subr.bf16.mxu0 %v945_v43  ;;  %v210_v61 = vld [vmem:[#allocation5 + $0x4b8] sm:$0xff]  ;;  %v825_v0 = vpack.c.bf16 %v82_v59, %v80_v58  ;;  %v81_v2 = vld [vmem:[#allocation5 + $0xb0] sm:$0xff]  ;;  %v207_v3 = vld [vmem:[#allocation5 + $0x4a0] sm:$0xff] }
  0x47   :  { %v953_v4 = vpack.c.bf16 %v210_v61, %v208_v60  ;;  %v209_v5 = vld [vmem:[#allocation5 + $0x4b0] sm:$0xff]  ;;  %v84_v6 = vld [vmem:[#allocation5 + $0xc8] sm:$0xff]  ;;  %v86_v7 = vld [vmem:[#allocation5 + $0xd8] sm:$0xff]  ;;  %v827_v10 = vpack.c.bf16 %v81_v2, %v79_v1  ;;  %v320_v61 = vunpack.c.0.s8 %v319_v47 }
  0x48   :  { %820 = vmatpush1.bf16.msra.mxu1 %v819_v50  ;;  %v212_v8 = vld [vmem:[#allocation5 + $0x4c8] sm:$0xff]  ;;  %v214_v9 = vld [vmem:[#allocation5 + $0x4d8] sm:$0xff]  ;;  %v955_v11 = vpack.c.bf16 %v209_v5, %v207_v3  ;;  %v829_v12 = vpack.c.bf16 %v86_v7, %v84_v6  ;;  %v83_v13 = vld [vmem:[#allocation5 + $0xc0] sm:$0xff] }
  0x49   :  { %948 = vmatpush1.bf16.msra.mxu0 %v947_v51  ;;  %822 = vmatprep.subr.bf16.mxu1 %v821_v52  ;;  %v85_v14 = vld [vmem:[#allocation5 + $0xd0] sm:$0xff]  ;;  %v211_v15 = vld [vmem:[#allocation5 + $0x4c0] sm:$0xff]  ;;  %v957_v16 = vpack.c.bf16 %v214_v9, %v212_v8  ;;  %v88_v18 = vld [vmem:[#allocation5 + $0xe8] sm:$0xff] }
  0x4a   :  { %950 = vmatprep.subr.bf16.mxu0 %v949_v56  ;;  %v213_v17 = vld [vmem:[#allocation5 + $0x4d0] sm:$0xff]  ;;  %v90_v19 = vld [vmem:[#allocation5 + $0xf8] sm:$0xff]  ;;  %v216_v20 = vld [vmem:[#allocation5 + $0x4e8] sm:$0xff]  ;;  %v831_v22 = vpack.c.bf16 %v85_v14, %v83_v13 }
  0x4b   :  { %v218_v21 = vld [vmem:[#allocation5 + $0x4f8] sm:$0xff]  ;;  %v959_v23 = vpack.c.bf16 %v213_v17, %v211_v15  ;;  %v833_v24 = vpack.c.bf16 %v90_v19, %v88_v18  ;;  %v87_v25 = vld [vmem:[#allocation5 + $0xe0] sm:$0xff]  ;;  %v89_v26 = vld [vmem:[#allocation5 + $0xf0] sm:$0xff] }
  0x4c   :  { %824 = vmatpush1.bf16.msra.mxu1 %v823_v62  ;;  %v215_v27 = vld [vmem:[#allocation5 + $0x4e0] sm:$0xff]  ;;  %v961_v28 = vpack.c.bf16 %v218_v21, %v216_v20  ;;  %v217_v29 = vld [vmem:[#allocation5 + $0x4f0] sm:$0xff]  ;;  %v92_v30 = vld [vmem:[#allocation5 + $0x108] sm:$0xff]  ;;  %v835_v34 = vpack.c.bf16 %v89_v26, %v87_v25  ;;  %v322_v62 = vshrl.u32 %v321_v48, 7 }
  0x4d   :  { %952 = vmatpush1.bf16.msra.mxu0 %v951_v63  ;;  %826 = vmatprep.subr.bf16.mxu1 %v825_v0  ;;  %v94_v31 = vld [vmem:[#allocation5 + $0x118] sm:$0xff]  ;;  %v220_v32 = vld [vmem:[#allocation5 + $0x508] sm:$0xff]  ;;  %v963_v35 = vpack.c.bf16 %v217_v29, %v215_v27  ;;  %v91_v37 = vld [vmem:[#allocation5 + $0x100] sm:$0xff] }
  0x4e   :  { %954 = vmatprep.subr.bf16.mxu0 %v953_v4  ;;  %v222_v33 = vld [vmem:[#allocation5 + $0x518] sm:$0xff]  ;;  %v837_v36 = vpack.c.bf16 %v94_v31, %v92_v30  ;;  %v93_v38 = vld [vmem:[#allocation5 + $0x110] sm:$0xff]  ;;  %v219_v39 = vld [vmem:[#allocation5 + $0x500] sm:$0xff] }
  0x4f   :  { %v965_v40 = vpack.c.bf16 %v222_v33, %v220_v32  ;;  %v221_v41 = vld [vmem:[#allocation5 + $0x510] sm:$0xff]  ;;  %v96_v42 = vld [vmem:[#allocation5 + $0x128] sm:$0xff]  ;;  %v98_v43 = vld [vmem:[#allocation5 + $0x138] sm:$0xff]  ;;  %v839_v49 = vpack.c.bf16 %v93_v38, %v91_v37 }
  0x50   :  { %828 = vmatpush1.bf16.msra.mxu1 %v827_v10  ;;  %v224_v44 = vld [vmem:[#allocation5 + $0x528] sm:$0xff]  ;;  %v226_v45 = vld [vmem:[#allocation5 + $0x538] sm:$0xff]  ;;  %v967_v50 = vpack.c.bf16 %v221_v41, %v219_v39  ;;  %v841_v51 = vpack.c.bf16 %v98_v43, %v96_v42  ;;  %v95_v52 = vld [vmem:[#allocation5 + $0x120] sm:$0xff] }
  0x51   :  { %956 = vmatpush1.bf16.msra.mxu0 %v955_v11  ;;  %830 = vmatprep.subr.bf16.mxu1 %v829_v12  ;;  %v97_v53 = vld [vmem:[#allocation5 + $0x130] sm:$0xff]  ;;  %v223_v54 = vld [vmem:[#allocation5 + $0x520] sm:$0xff]  ;;  %v969_v55 = vpack.c.bf16 %v226_v45, %v224_v44  ;;  %v100_v57 = vld [vmem:[#allocation5 + $0x148] sm:$0xff]  ;;  %v1274_v11 = vsub.s32 %v320_v61, %v322_v62 }
  0x52   :  { %958 = vmatprep.subr.bf16.mxu0 %v957_v16  ;;  %v225_v56 = vld [vmem:[#allocation5 + $0x530] sm:$0xff]  ;;  %v102_v58 = vld [vmem:[#allocation5 + $0x158] sm:$0xff]  ;;  %v228_v59 = vld [vmem:[#allocation5 + $0x548] sm:$0xff]  ;;  %v843_v63 = vpack.c.bf16 %v97_v53, %v95_v52 }
  0x53   :  { %v230_v60 = vld [vmem:[#allocation5 + $0x558] sm:$0xff]  ;;  %v971_v0 = vpack.c.bf16 %v225_v56, %v223_v54  ;;  %v845_v1 = vpack.c.bf16 %v102_v58, %v100_v57  ;;  %v99_v2 = vld [vmem:[#allocation5 + $0x140] sm:$0xff]  ;;  %v101_v3 = vld [vmem:[#allocation5 + $0x150] sm:$0xff] }
  0x54   :  { %832 = vmatpush1.bf16.msra.mxu1 %v831_v22  ;;  %v227_v4 = vld [vmem:[#allocation5 + $0x540] sm:$0xff]  ;;  %v973_v5 = vpack.c.bf16 %v230_v60, %v228_v59  ;;  %v229_v6 = vld [vmem:[#allocation5 + $0x550] sm:$0xff]  ;;  %v104_v7 = vld [vmem:[#allocation5 + $0x168] sm:$0xff]  ;;  %v847_v12 = vpack.c.bf16 %v101_v3, %v99_v2 }
  0x55   :  { %960 = vmatpush1.bf16.msra.mxu0 %v959_v23  ;;  %834 = vmatprep.subr.bf16.mxu1 %v833_v24  ;;  %v106_v8 = vld [vmem:[#allocation5 + $0x178] sm:$0xff]  ;;  %v232_v9 = vld [vmem:[#allocation5 + $0x568] sm:$0xff]  ;;  %v103_v13 = vld [vmem:[#allocation5 + $0x160] sm:$0xff]  ;;  %v975_v14 = vpack.c.bf16 %v229_v6, %v227_v4 }
  0x56   :  { %962 = vmatprep.subr.bf16.mxu0 %v961_v28  ;;  %v234_v10 = vld [vmem:[#allocation5 + $0x578] sm:$0xff]  ;;  %v849_v15 = vpack.c.bf16 %v106_v8, %v104_v7  ;;  %v105_v16 = vld [vmem:[#allocation5 + $0x170] sm:$0xff]  ;;  %v231_v17 = vld [vmem:[#allocation5 + $0x560] sm:$0xff] }
  0x57   :  { %v233_v18 = vld [vmem:[#allocation5 + $0x570] sm:$0xff]  ;;  %v977_v19 = vpack.c.bf16 %v234_v10, %v232_v9  ;;  %v108_v20 = vld [vmem:[#allocation5 + $0x188] sm:$0xff]  ;;  %v110_v21 = vld [vmem:[#allocation5 + $0x198] sm:$0xff]  ;;  %v851_v27 = vpack.c.bf16 %v105_v16, %v103_v13 }
  0x58   :  { %836 = vmatpush1.bf16.msra.mxu1 %v835_v34  ;;  %v1276_v22 = vld [vmem:[#allocation2] sm:$0xff]  ;;  %v236_v23 = vld [vmem:[#allocation5 + $0x588] sm:$0xff]  ;;  %v238_v24 = vld [vmem:[#allocation5 + $0x598] sm:$0xff]  ;;  %v979_v29 = vpack.c.bf16 %v233_v18, %v231_v17  ;;  %v853_v30 = vpack.c.bf16 %v110_v21, %v108_v20 }
  0x59   :  { %964 = vmatpush1.bf16.msra.mxu0 %v963_v35  ;;  %838 = vmatprep.subr.bf16.mxu1 %v837_v36  ;;  %v1280_v25 = vrot.slane %v1276_v22, %v1274_v11  ;;  %v1282_v26 = vld [vmem:[#allocation2 + $0x8] sm:$0xff]  ;;  %v107_v31 = vld [vmem:[#allocation5 + $0x180] sm:$0xff]  ;;  %v109_v32 = vld [vmem:[#allocation5 + $0x190] sm:$0xff]  ;;  %v981_v35 = vpack.c.bf16 %v238_v24, %v236_v23  ;;  %v317_v10 = vcombine.high %v1276_v22, %v1276_v22 }
  0x5a   :  { %966 = vmatprep.subr.bf16.mxu0 %v965_v40  ;;  %v1286_v28 = vrot.slane %v1282_v26, %v1274_v11  ;;  %v235_v33 = vld [vmem:[#allocation5 + $0x580] sm:$0xff]  ;;  %v237_v36 = vld [vmem:[#allocation5 + $0x590] sm:$0xff]  ;;  %v112_v37 = vld [vmem:[#allocation5 + $0x1a8] sm:$0xff]  ;;  %v855_v42 = vpack.c.bf16 %v109_v32, %v107_v31 }
  0x5b   :  { %v332_v34 = vcombine.high %v1280_v25, %v1280_v25  ;;  %v114_v38 = vld [vmem:[#allocation5 + $0x1b8] sm:$0xff]  ;;  %v240_v40 = vld [vmem:[#allocation5 + $0x5a8] sm:$0xff]  ;;  %v983_v43 = vpack.c.bf16 %v237_v36, %v235_v33  ;;  %v111_v45 = vld [vmem:[#allocation5 + $0x1a0] sm:$0xff] }
  0x5c   :  { %840 = vmatpush1.bf16.msra.mxu1 %v839_v49  ;;  %v349_v39 = vcombine.high %v1286_v28, %v1286_v28  ;;  %v242_v41 = vld [vmem:[#allocation5 + $0x5b8] sm:$0xff]  ;;  %v857_v44 = vpack.c.bf16 %v114_v38, %v112_v37  ;;  %v113_v46 = vld [vmem:[#allocation5 + $0x1b0] sm:$0xff]  ;;  %v239_v47 = vld [vmem:[#allocation5 + $0x5a0] sm:$0xff] }
  0x5d   :  { %968 = vmatpush1.bf16.msra.mxu0 %v967_v50  ;;  %842 = vmatprep.subr.bf16.mxu1 %v841_v51  ;;  %v985_v48 = vpack.c.bf16 %v242_v41, %v240_v40  ;;  %v241_v49 = vld [vmem:[#allocation5 + $0x5b0] sm:$0xff]  ;;  %v116_v50 = vld [vmem:[#allocation5 + $0x1c8] sm:$0xff]  ;;  %v118_v51 = vld [vmem:[#allocation5 + $0x1d8] sm:$0xff]  ;;  %v859_v54 = vpack.c.bf16 %v113_v46, %v111_v45 }
  0x5e   :  { %970 = vmatprep.subr.bf16.mxu0 %v969_v55  ;;  %423 = vmatprep.mubr.f32.mxu1 %v332_v34  ;;  %v244_v52 = vld [vmem:[#allocation5 + $0x5c8] sm:$0xff]  ;;  %v246_v53 = vld [vmem:[#allocation5 + $0x5d8] sm:$0xff]  ;;  %v987_v55 = vpack.c.bf16 %v241_v49, %v239_v47  ;;  %v861_v56 = vpack.c.bf16 %v118_v51, %v116_v50  ;;  %v115_v57 = vld [vmem:[#allocation5 + $0x1c0] sm:$0xff] }
  0x5f   :  { %565 = vmatprep.mubr.f32.mxu0 %v349_v39  ;;  %v117_v58 = vld [vmem:[#allocation5 + $0x1d0] sm:$0xff]  ;;  %v243_v59 = vld [vmem:[#allocation5 + $0x5c0] sm:$0xff]  ;;  %v989_v60 = vpack.c.bf16 %v246_v53, %v244_v52  ;;  %v120_v62 = vld [vmem:[#allocation5 + $0x1e8] sm:$0xff] }
  0x60   :  { %844 = vmatpush1.bf16.msra.mxu1 %v843_v63  ;;  %v245_v61 = vld [vmem:[#allocation5 + $0x5d0] sm:$0xff]  ;;  %v122_v63 = vld [vmem:[#allocation5 + $0x1f8] sm:$0xff]  ;;  %v863_v2 = vpack.c.bf16 %v117_v58, %v115_v57  ;;  %v247_v7 = vld [vmem:[#allocation5 + $0x5e0] sm:$0xff] }
  0x61   :  { %972 = vmatpush1.bf16.msra.mxu0 %v971_v0  ;;  %846 = vmatprep.subr.bf16.mxu1 %v845_v1  ;;  %v248_v0 = vld [vmem:[#allocation5 + $0x5e8] sm:$0xff]  ;;  %v250_v1 = vld [vmem:[#allocation5 + $0x5f8] sm:$0xff]  ;;  %v991_v3 = vpack.c.bf16 %v245_v61, %v243_v59  ;;  %v865_v4 = vpack.c.bf16 %v122_v63, %v120_v62  ;;  %v121_v6 = vld [vmem:[#allocation5 + $0x1f0] sm:$0xff] }
  0x62   :  { %974 = vmatprep.subr.bf16.mxu0 %v973_v5  ;;  %v119_v5 = vld [vmem:[#allocation5 + $0x1e0] sm:$0xff]  ;;  %v993_v8 = vpack.c.bf16 %v250_v1, %v248_v0  ;;  %v249_v9 = vld [vmem:[#allocation5 + $0x5f0] sm:$0xff]  ;;  %v126_v13 = vld [vmem:[#allocation5 + $0x218] sm:$0xff] }
  0x63   :  { %v254_v16 = vld [vmem:[#allocation5 + $0x618] sm:$0xff]  ;;  %v867_v17 = vpack.c.bf16 %v121_v6, %v119_v5  ;;  %v995_v18 = vpack.c.bf16 %v249_v9, %v247_v7  ;;  %v123_v20 = vld [vmem:[#allocation5 + $0x200] sm:$0xff]  ;;  %v125_v21 = vld [vmem:[#allocation5 + $0x210] sm:$0xff] }
  0x64   :  { %848 = vmatpush1.bf16.msra.mxu1 %v847_v12  ;;  %v124_v12 = vld [vmem:[#allocation5 + $0x208] sm:$0xff]  ;;  %v251_v23 = vld [vmem:[#allocation5 + $0x600] sm:$0xff]  ;;  %v258_v31 = vld [vmem:[#allocation5 + $0x638] sm:$0xff]  ;;  %v871_v33 = vpack.c.bf16 %v125_v21, %v123_v20 }
  0x65   :  { %976 = vmatpush1.bf16.msra.mxu0 %v975_v14  ;;  %850 = vmatprep.subr.bf16.mxu1 %v849_v15  ;;  %v334_v14 = vcombine.high %v1282_v26, %v1282_v26  ;;  %v252_v15 = vld [vmem:[#allocation5 + $0x608] sm:$0xff]  ;;  %v127_v36 = vld [vmem:[#allocation5 + $0x220] sm:$0xff]  ;;  %v129_v37 = vld [vmem:[#allocation5 + $0x230] sm:$0xff] }
  0x66   :  { %978 = vmatprep.subr.bf16.mxu0 %v977_v19  ;;  %v869_v19 = vpack.c.bf16 %v126_v13, %v124_v12  ;;  %v997_v24 = vpack.c.bf16 %v254_v16, %v252_v15  ;;  %v128_v22 = vld [vmem:[#allocation5 + $0x228] sm:$0xff]  ;;  %v255_v38 = vld [vmem:[#allocation5 + $0x620] sm:$0xff]  ;;  %v257_v40 = vld [vmem:[#allocation5 + $0x630] sm:$0xff]  ;;  %v875_v46 = vpack.c.bf16 %v129_v37, %v127_v36 }
  0x67   :  { %v256_v26 = vld [vmem:[#allocation5 + $0x628] sm:$0xff]  ;;  %v1300_v32 = vrot.slane %v334_v14, %v1274_v11  ;;  %v1003_v47 = vpack.c.bf16 %v257_v40, %v255_v38  ;;  %v131_v49 = vld [vmem:[#allocation5 + $0x240] sm:$0xff]  ;;  %v133_v50 = vld [vmem:[#allocation5 + $0x250] sm:$0xff] }
  0x68   :  { %852 = vmatpush1.bf16.msra.mxu1 %v851_v27  ;;  %v253_v27 = vld [vmem:[#allocation5 + $0x610] sm:$0xff]  ;;  %v1001_v39 = vpack.c.bf16 %v258_v31, %v256_v26  ;;  %v132_v41 = vld [vmem:[#allocation5 + $0x248] sm:$0xff]  ;;  %v259_v51 = vld [vmem:[#allocation5 + $0x640] sm:$0xff]  ;;  %v879_v57 = vpack.c.bf16 %v133_v50, %v131_v49 }
  0x69   :  { %980 = vmatpush1.bf16.msra.mxu0 %v979_v29  ;;  %854 = vmatprep.subr.bf16.mxu1 %v853_v30  ;;  %v130_v29 = vld [vmem:[#allocation5 + $0x238] sm:$0xff]  ;;  %v1297_v30 = vrot.slane %v317_v10, %v1274_v11  ;;  %v999_v34 = vpack.c.bf16 %v253_v27, %v251_v23  ;;  %v260_v11 = vld [vmem:[#allocation5 + $0x648] sm:$0xff]  ;;  %v350_v45 = vcombine.high %v1300_v32, %v1300_v32  ;;  %v261_v53 = vld [vmem:[#allocation5 + $0x650] sm:$0xff] }
  0x6a   :  { %982 = vmatprep.subr.bf16.mxu0 %v981_v35  ;;  %v873_v35 = vpack.c.bf16 %v130_v29, %v128_v22  ;;  %v135_v59 = vld [vmem:[#allocation5 + $0x260] sm:$0xff]  ;;  %v265_v63 = vld [vmem:[#allocation5 + $0x670] sm:$0xff]  ;;  %v140_v0 = vld [vmem:[#allocation5 + $0x288] sm:$0xff] }
  0x6b   :  { %v263_v61 = vld [vmem:[#allocation5 + $0x660] sm:$0xff]  ;;  %v142_v1 = vld [vmem:[#allocation5 + $0x298] sm:$0xff]  ;;  %v269_v12 = vld [vmem:[#allocation5 + $0x690] sm:$0xff] }
  0x6c   :  { %856 = vmatpush1.bf16.msra.mxu1 %v855_v42  ;;  %v134_v42 = vld [vmem:[#allocation5 + $0x258] sm:$0xff]  ;;  %v1011_v5 = vpack.c.bf16 %v265_v63, %v263_v61  ;;  %v885_v6 = vpack.c.bf16 %v142_v1, %v140_v0  ;;  %v139_v7 = vld [vmem:[#allocation5 + $0x280] sm:$0xff]  ;;  %v144_v13 = vld [vmem:[#allocation5 + $0x2a8] sm:$0xff] }
  0x6d   :  { %984 = vmatpush1.bf16.msra.mxu0 %v983_v43  ;;  %858 = vmatprep.subr.bf16.mxu1 %v857_v44  ;;  %v333_v43 = vcombine.high %v1297_v30, %v1297_v30  ;;  %v262_v44 = vld [vmem:[#allocation5 + $0x658] sm:$0xff]  ;;  %v267_v9 = vld [vmem:[#allocation5 + $0x680] sm:$0xff]  ;;  %v272_v15 = vld [vmem:[#allocation5 + $0x6a8] sm:$0xff] }
  0x6e   :  { %986 = vmatprep.subr.bf16.mxu0 %v985_v48  ;;  %v877_v48 = vpack.c.bf16 %v134_v42, %v132_v41  ;;  %v1005_v52 = vpack.c.bf16 %v262_v44, %v260_v11  ;;  %v146_v14 = vld [vmem:[#allocation5 + $0x2b8] sm:$0xff]  ;;  %v143_v20 = vld [vmem:[#allocation5 + $0x2a0] sm:$0xff]  ;;  %v145_v21 = vld [vmem:[#allocation5 + $0x2b0] sm:$0xff] }
  0x6f   :  { %v274_v16 = vld [vmem:[#allocation5 + $0x6b8] sm:$0xff]  ;;  %v271_v23 = vld [vmem:[#allocation5 + $0x6a0] sm:$0xff]  ;;  %v273_v27 = vld [vmem:[#allocation5 + $0x6b0] sm:$0xff] }
  0x70   :  { %860 = vmatpush1.bf16.msra.mxu1 %v859_v54  ;;  %v138_v54 = vld [vmem:[#allocation5 + $0x278] sm:$0xff]  ;;  %v148_v22 = vld [vmem:[#allocation5 + $0x2c8] sm:$0xff]  ;;  %v147_v36 = vld [vmem:[#allocation5 + $0x2c0] sm:$0xff] }
  0x71   :  { %988 = vmatpush1.bf16.msra.mxu0 %v987_v55  ;;  %862 = vmatprep.subr.bf16.mxu1 %v861_v56  ;;  %v264_v55 = vld [vmem:[#allocation5 + $0x668] sm:$0xff]  ;;  %v266_v56 = vld [vmem:[#allocation5 + $0x678] sm:$0xff]  ;;  %v149_v37 = vld [vmem:[#allocation5 + $0x2d0] sm:$0xff] }
  0x72   :  { %990 = vmatprep.subr.bf16.mxu0 %v989_v60  ;;  %v137_v60 = vld [vmem:[#allocation5 + $0x270] sm:$0xff]  ;;  %v1009_v62 = vpack.c.bf16 %v266_v56, %v264_v55  ;;  %v150_v29 = vld [vmem:[#allocation5 + $0x2d8] sm:$0xff]  ;;  %v276_v26 = vld [vmem:[#allocation5 + $0x6c8] sm:$0xff]  ;;  %v895_v44 = vpack.c.bf16 %v149_v37, %v147_v36 }
  0x73   :  { %v278_v31 = vld [vmem:[#allocation5 + $0x6d8] sm:$0xff]  ;;  %v275_v38 = vld [vmem:[#allocation5 + $0x6c0] sm:$0xff]  ;;  %v277_v40 = vld [vmem:[#allocation5 + $0x6d0] sm:$0xff] }
  0x74   :  { %864 = vmatpush1.bf16.msra.mxu1 %v863_v2  ;;  %v268_v2 = vld [vmem:[#allocation5 + $0x688] sm:$0xff]  ;;  %v154_v42 = vld [vmem:[#allocation5 + $0x2f8] sm:$0xff]  ;;  %v279_v49 = vld [vmem:[#allocation5 + $0x6e0] sm:$0xff] }
  0x75   :  { %992 = vmatpush1.bf16.msra.mxu0 %v991_v3  ;;  %866 = vmatprep.subr.bf16.mxu1 %v865_v4  ;;  %v270_v3 = vld [vmem:[#allocation5 + $0x698] sm:$0xff]  ;;  %v883_v4 = vpack.c.bf16 %v137_v60, %v135_v59  ;;  %v152_v41 = vld [vmem:[#allocation5 + $0x2e8] sm:$0xff]  ;;  %v283_v59 = vld [vmem:[#allocation5 + $0x700] sm:$0xff] }
  0x76   :  { %994 = vmatprep.subr.bf16.mxu0 %v993_v8  ;;  %v141_v8 = vld [vmem:[#allocation5 + $0x290] sm:$0xff]  ;;  %v1013_v10 = vpack.c.bf16 %v270_v3, %v268_v2  ;;  %v282_v11 = vld [vmem:[#allocation5 + $0x6f8] sm:$0xff]  ;;  %v288_v0 = vld [vmem:[#allocation5 + $0x728] sm:$0xff] }
  0x77   :  { %v285_v61 = vld [vmem:[#allocation5 + $0x710] sm:$0xff]  ;;  %v162_v63 = vld [vmem:[#allocation5 + $0x338] sm:$0xff]  ;;  %v295_v36 = vld [vmem:[#allocation5 + $0x760] sm:$0xff] }
  0x78   :  { %868 = vmatpush1.bf16.msra.mxu1 %v867_v17  ;;  %v887_v17 = vpack.c.bf16 %v141_v8, %v139_v7  ;;  %v290_v1 = vld [vmem:[#allocation5 + $0x738] sm:$0xff]  ;;  %v1031_v3 = vpack.c.bf16 %v285_v61, %v283_v59  ;;  %v287_v7 = vld [vmem:[#allocation5 + $0x720] sm:$0xff]  ;;  %v305_v59 = vld [vmem:[#allocation5 + $0x7b0] sm:$0xff] }
  0x79   :  { %996 = vmatpush1.bf16.msra.mxu0 %v995_v18  ;;  %870 = vmatprep.subr.bf16.mxu1 %v869_v19  ;;  %v1015_v18 = vpack.c.bf16 %v269_v12, %v267_v9  ;;  %v889_v19 = vpack.c.bf16 %v146_v14, %v144_v13  ;;  %v1033_v8 = vpack.c.bf16 %v290_v1, %v288_v0  ;;  %v289_v9 = vld [vmem:[#allocation5 + $0x730] sm:$0xff]  ;;  %v166_v12 = vld [vmem:[#allocation5 + $0x358] sm:$0xff]  ;;  %v292_v13 = vld [vmem:[#allocation5 + $0x748] sm:$0xff] }
  0x7a   :  { %998 = vmatprep.subr.bf16.mxu0 %v997_v24  ;;  %v1017_v24 = vpack.c.bf16 %v274_v16, %v272_v15  ;;  %v294_v14 = vld [vmem:[#allocation5 + $0x758] sm:$0xff]  ;;  %v1035_v16 = vpack.c.bf16 %v289_v9, %v287_v7  ;;  %v309_v7 = vld [vmem:[#allocation5 + $0x7d0] sm:$0xff] }
  0x7b   :  { %424 = vmatmul.mubr.f32.vlgmr.msra.gmra.mrb[0].mxu1 %v1280_v25  ;;  %v136_v25 = vld [vmem:[#allocation5 + $0x268] sm:$0xff]  ;;  %v182_v61 = vld [vmem:[#allocation5 + $0x3d8] sm:$0xff] }
  0x7c   :  { %872 = vmatpush1.bf16.msra.mxu1 %v871_v33  ;;  %566 = vmatmul.mubr.f32.vlgmr.msra.gmra.mrb[0].mxu0 %v1286_v28  ;;  %v1007_v28 = vpack.c.bf16 %v261_v53, %v259_v51  ;;  %v881_v58 = vpack.c.bf16 %v138_v54, %v136_v25  ;;  %v891_v33 = vpack.c.bf16 %v145_v21, %v143_v20  ;;  %v281_v51 = vld [vmem:[#allocation5 + $0x6f0] sm:$0xff]  ;;  %v158_v53 = vld [vmem:[#allocation5 + $0x318] sm:$0xff]  ;;  %v284_v25 = vld [vmem:[#allocation5 + $0x708] sm:$0xff] }
  0x7d   :  { %1000 = vmatpush1.bf16.msra.mxu0 %v999_v34  ;;  %874 = vmatprep.subr.bf16.mxu1 %v873_v35  ;;  %v1019_v34 = vpack.c.bf16 %v273_v27, %v271_v23  ;;  %v893_v35 = vpack.c.bf16 %v150_v29, %v148_v22  ;;  %v286_v54 = vld [vmem:[#allocation5 + $0x718] sm:$0xff]  ;;  %v1027_v56 = vpack.c.bf16 %v281_v51, %v279_v49  ;;  %v291_v20 = vld [vmem:[#allocation5 + $0x740] sm:$0xff]  ;;  %v293_v23 = vld [vmem:[#allocation5 + $0x750] sm:$0xff] }
  0x7e   :  { %1002 = vmatprep.subr.bf16.mxu0 %v1001_v39  ;;  %494 = vmatprep.mubr.f32.mxu1 %v333_v43  ;;  %v1021_v39 = vpack.c.bf16 %v278_v31, %v276_v26  ;;  %v280_v43 = vld [vmem:[#allocation5 + $0x6e8] sm:$0xff]  ;;  %v1029_v60 = vpack.c.bf16 %v286_v54, %v284_v25  ;;  %v1037_v21 = vpack.c.bf16 %v294_v14, %v292_v13  ;;  %v170_v27 = vld [vmem:[#allocation5 + $0x378] sm:$0xff]  ;;  %v301_v49 = vld [vmem:[#allocation5 + $0x790] sm:$0xff] }
  0x7f   :  { %636 = vmatprep.mubr.f32.mxu0 %v350_v45  ;;  %v1023_v45 = vpack.c.bf16 %v277_v40, %v275_v38  ;;  %v1025_v50 = vpack.c.bf16 %v282_v11, %v280_v43  ;;  %v296_v22 = vld [vmem:[#allocation5 + $0x768] sm:$0xff]  ;;  %v298_v29 = vld [vmem:[#allocation5 + $0x778] sm:$0xff]  ;;  %v1039_v31 = vpack.c.bf16 %v293_v23, %v291_v20  ;;  %v297_v38 = vld [vmem:[#allocation5 + $0x770] sm:$0xff] }
  0x80   :  { %876 = vmatpush1.bf16.msra.mxu1 %v875_v46  ;;  %v897_v46 = vpack.c.bf16 %v154_v42, %v152_v41  ;;  %v1041_v37 = vpack.c.bf16 %v298_v29, %v296_v22  ;;  %v174_v40 = vld [vmem:[#allocation5 + $0x398] sm:$0xff]  ;;  %v300_v41 = vld [vmem:[#allocation5 + $0x788] sm:$0xff]  ;;  %v1043_v11 = vpack.c.bf16 %v297_v38, %v295_v36  ;;  %v313_v20 = vld [vmem:[#allocation5 + $0x7f0] sm:$0xff] }
  0x81   :  { %1004 = vmatpush1.bf16.msra.mxu0 %v1003_v47  ;;  %878 = vmatprep.subr.bf16.mxu1 %v877_v48  ;;  %v151_v47 = vld [vmem:[#allocation5 + $0x2e0] sm:$0xff]  ;;  %v153_v48 = vld [vmem:[#allocation5 + $0x2f0] sm:$0xff]  ;;  %v302_v42 = vld [vmem:[#allocation5 + $0x798] sm:$0xff] }
  0x82   :  { %1006 = vmatprep.subr.bf16.mxu0 %v1005_v52  ;;  %v156_v52 = vld [vmem:[#allocation5 + $0x308] sm:$0xff]  ;;  %v899_v55 = vpack.c.bf16 %v153_v48, %v151_v47  ;;  %v299_v47 = vld [vmem:[#allocation5 + $0x780] sm:$0xff]  ;;  %v1045_v48 = vpack.c.bf16 %v302_v42, %v300_v41  ;;  %v178_v51 = vld [vmem:[#allocation5 + $0x3b8] sm:$0xff] }
  0x83   :  { %v1047_v54 = vpack.c.bf16 %v301_v49, %v299_v47  ;;  %v186_v9 = vld [vmem:[#allocation5 + $0x3f8] sm:$0xff]  ;;  %v660_v23 = vld [vmem:[#allocation7 + $0x88] sm:$0xff]  ;;  %v643_v29 = vld [vmem:[#allocation7] sm:$0xff] }
  0x84   :  { %880 = vmatpush1.bf16.msra.mxu1 %v879_v57  ;;  %v901_v57 = vpack.c.bf16 %v158_v53, %v156_v52  ;;  %v304_v52 = vld [vmem:[#allocation5 + $0x7a8] sm:$0xff]  ;;  %v306_v53 = vld [vmem:[#allocation5 + $0x7b8] sm:$0xff]  ;;  %v645_v36 = vld [vmem:[#allocation7 + $0x10] sm:$0xff] }
  0x85   :  { %1008 = vmatpush1.bf16.msra.mxu0 %v1007_v28  ;;  %882 = vmatprep.subr.bf16.mxu1 %v881_v58  ;;  %v155_v28 = vld [vmem:[#allocation5 + $0x300] sm:$0xff]  ;;  %v157_v58 = vld [vmem:[#allocation5 + $0x310] sm:$0xff] }
  0x86   :  { %1010 = vmatprep.subr.bf16.mxu0 %v1009_v62  ;;  %v160_v62 = vld [vmem:[#allocation5 + $0x328] sm:$0xff]  ;;  %v903_v2 = vpack.c.bf16 %v157_v58, %v155_v28  ;;  %v303_v28 = vld [vmem:[#allocation5 + $0x7a0] sm:$0xff]  ;;  %v1049_v58 = vpack.c.bf16 %v306_v53, %v304_v52  ;;  %v649_v47 = vld [vmem:[#allocation7 + $0x30] sm:$0xff] }
  0x87   :  { %v1051_v1 = vpack.c.bf16 %v305_v59, %v303_v28  ;;  %v663_v38 = vld [vmem:[#allocation7 + $0xa0] sm:$0xff]  ;;  %v652_v52 = vld [vmem:[#allocation7 + $0x48] sm:$0xff]  ;;  %v669_v53 = vld [vmem:[#allocation7 + $0xd0] sm:$0xff] }
  0x88   :  { %884 = vmatpush1.bf16.msra.mxu1 %v883_v4  ;;  %v905_v4 = vpack.c.bf16 %v162_v63, %v160_v62  ;;  %v308_v62 = vld [vmem:[#allocation5 + $0x7c8] sm:$0xff]  ;;  %v310_v63 = vld [vmem:[#allocation5 + $0x7d8] sm:$0xff]  ;;  %v647_v42 = vld [vmem:[#allocation7 + $0x20] sm:$0xff] }
  0x89   :  { %1012 = vmatpush1.bf16.msra.mxu0 %v1011_v5  ;;  %886 = vmatprep.subr.bf16.mxu1 %v885_v6  ;;  %v159_v5 = vld [vmem:[#allocation5 + $0x320] sm:$0xff]  ;;  %v161_v6 = vld [vmem:[#allocation5 + $0x330] sm:$0xff] }
  0x8a   :  { %1014 = vmatprep.subr.bf16.mxu0 %v1013_v10  ;;  %v164_v10 = vld [vmem:[#allocation5 + $0x348] sm:$0xff]  ;;  %v907_v15 = vpack.c.bf16 %v161_v6, %v159_v5  ;;  %v307_v5 = vld [vmem:[#allocation5 + $0x7c0] sm:$0xff]  ;;  %v1053_v6 = vpack.c.bf16 %v310_v63, %v308_v62 }
  0x8b   :  { %v1055_v14 = vpack.c.bf16 %v309_v7, %v307_v5  ;;  %v667_v49 = vld [vmem:[#allocation7 + $0xc0] sm:$0xff]  ;;  %v656_v62 = vld [vmem:[#allocation7 + $0x68] sm:$0xff] }
  0x8c   :  { %888 = vmatpush1.bf16.msra.mxu1 %v887_v17  ;;  %v909_v17 = vpack.c.bf16 %v166_v12, %v164_v10  ;;  %v312_v10 = vld [vmem:[#allocation5 + $0x7e8] sm:$0xff]  ;;  %v314_v12 = vld [vmem:[#allocation5 + $0x7f8] sm:$0xff]  ;;  %v671_v28 = vld [vmem:[#allocation7 + $0xe0] sm:$0xff] }
  0x8d   :  { %1016 = vmatpush1.bf16.msra.mxu0 %v1015_v18  ;;  %890 = vmatprep.subr.bf16.mxu1 %v889_v19  ;;  %v163_v18 = vld [vmem:[#allocation5 + $0x340] sm:$0xff]  ;;  %v165_v19 = vld [vmem:[#allocation5 + $0x350] sm:$0xff] }
  0x8e   :  { %1018 = vmatprep.subr.bf16.mxu0 %v1017_v24  ;;  %v168_v24 = vld [vmem:[#allocation5 + $0x368] sm:$0xff]  ;;  %v911_v26 = vpack.c.bf16 %v165_v19, %v163_v18  ;;  %v311_v18 = vld [vmem:[#allocation5 + $0x7e0] sm:$0xff]  ;;  %v1057_v19 = vpack.c.bf16 %v314_v12, %v312_v10 }
  0x90   :  { %892 = vmatpush1.bf16.msra.mxu1 %v891_v33  ;;  %v913_v33 = vpack.c.bf16 %v170_v27, %v168_v24  ;;  %v1059_v27 = vpack.c.bf16 %v313_v20, %v311_v18 }
  0x91   :  { %1020 = vmatpush1.bf16.msra.mxu0 %v1019_v34  ;;  %894 = vmatprep.subr.bf16.mxu1 %v893_v35  ;;  %v167_v34 = vld [vmem:[#allocation5 + $0x360] sm:$0xff]  ;;  %v169_v35 = vld [vmem:[#allocation5 + $0x370] sm:$0xff] }
  0x92   :  { %1022 = vmatprep.subr.bf16.mxu0 %v1021_v39  ;;  %v172_v39 = vld [vmem:[#allocation5 + $0x388] sm:$0xff]  ;;  %v915_v43 = vpack.c.bf16 %v169_v35, %v167_v34 }
  0x94   :  { %896 = vmatpush1.bf16.msra.mxu1 %v895_v44  ;;  %v917_v44 = vpack.c.bf16 %v174_v40, %v172_v39  ;;  %v664_v39 = vld [vmem:[#allocation7 + $0xa8] sm:$0xff] }
  0x95   :  { %1024 = vmatpush1.bf16.msra.mxu0 %v1023_v45  ;;  %898 = vmatprep.subr.bf16.mxu1 %v897_v46  ;;  %v171_v45 = vld [vmem:[#allocation5 + $0x380] sm:$0xff]  ;;  %v173_v46 = vld [vmem:[#allocation5 + $0x390] sm:$0xff]  ;;  %v1069_v41 = vpack.c.bf16 %v664_v39, %v663_v38 }
  0x96   :  { %1026 = vmatprep.subr.bf16.mxu0 %v1025_v50  ;;  %v176_v50 = vld [vmem:[#allocation5 + $0x3a8] sm:$0xff]  ;;  %v919_v25 = vpack.c.bf16 %v173_v46, %v171_v45 }
  0x98   :  { %900 = vmatpush1.bf16.msra.mxu1 %v899_v55  ;;  %v921_v55 = vpack.c.bf16 %v178_v51, %v176_v50  ;;  %v668_v50 = vld [vmem:[#allocation7 + $0xc8] sm:$0xff]  ;;  %v651_v51 = vld [vmem:[#allocation7 + $0x40] sm:$0xff] }
  0x99   :  { %1028 = vmatpush1.bf16.msra.mxu0 %v1027_v56  ;;  %902 = vmatprep.subr.bf16.mxu1 %v901_v57  ;;  %v175_v56 = vld [vmem:[#allocation5 + $0x3a0] sm:$0xff]  ;;  %v177_v57 = vld [vmem:[#allocation5 + $0x3b0] sm:$0xff] }
  0x9a   :  { %1030 = vmatprep.subr.bf16.mxu0 %v1029_v60  ;;  %v180_v60 = vld [vmem:[#allocation5 + $0x3c8] sm:$0xff]  ;;  %v923_v0 = vpack.c.bf16 %v177_v57, %v175_v56  ;;  %v653_v56 = vld [vmem:[#allocation7 + $0x50] sm:$0xff]  ;;  %v654_v57 = vld [vmem:[#allocation7 + $0x58] sm:$0xff] }
  0x9b   :  { %v1083_v59 = vpack.c.bf16 %v654_v57, %v653_v56 }
  0x9c   :  { %904 = vmatpush1.bf16.msra.mxu1 %v903_v2  ;;  %v925_v2 = vpack.c.bf16 %v182_v61, %v180_v60  ;;  %v655_v61 = vld [vmem:[#allocation7 + $0x60] sm:$0xff] }
  0x9d   :  { %1032 = vmatpush1.bf16.msra.mxu0 %v1031_v3  ;;  %906 = vmatprep.subr.bf16.mxu1 %v905_v4  ;;  %v179_v3 = vld [vmem:[#allocation5 + $0x3c0] sm:$0xff]  ;;  %v181_v4 = vld [vmem:[#allocation5 + $0x3d0] sm:$0xff]  ;;  %v1087_v63 = vpack.c.bf16 %v656_v62, %v655_v61 }
  0x9e   :  { %1034 = vmatprep.subr.bf16.mxu0 %v1033_v8  ;;  %v184_v8 = vld [vmem:[#allocation5 + $0x3e8] sm:$0xff]  ;;  %v927_v13 = vpack.c.bf16 %v181_v4, %v179_v3  ;;  %v657_v3 = vld [vmem:[#allocation7 + $0x70] sm:$0xff]  ;;  %v658_v4 = vld [vmem:[#allocation7 + $0x78] sm:$0xff] }
  0x9f   :  { %v1091_v5 = vpack.c.bf16 %v658_v4, %v657_v3 }
  0xa0   :  { %908 = vmatpush1.bf16.msra.mxu1 %v907_v15  ;;  %v929_v15 = vpack.c.bf16 %v186_v9, %v184_v8 }
  0xa1   :  { %1036 = vmatpush1.bf16.msra.mxu0 %v1035_v16  ;;  %910 = vmatprep.subr.bf16.mxu1 %v909_v17  ;;  %v183_v16 = vld [vmem:[#allocation5 + $0x3e0] sm:$0xff]  ;;  %v185_v17 = vld [vmem:[#allocation5 + $0x3f0] sm:$0xff] }
  0xa2   :  { %1038 = vmatprep.subr.bf16.mxu0 %v1037_v21  ;;  %v659_v21 = vld [vmem:[#allocation7 + $0x80] sm:$0xff]  ;;  %v931_v24 = vpack.c.bf16 %v185_v17, %v183_v16 }
  0xa3   :  { %v1061_v22 = vpack.c.bf16 %v660_v23, %v659_v21 }
  0xa4   :  { %912 = vmatpush1.bf16.msra.mxu1 %v911_v26  ;;  %v644_v26 = vld [vmem:[#allocation7 + $0x8] sm:$0xff] }
  0xa5   :  { %1040 = vmatpush1.bf16.msra.mxu0 %v1039_v31  ;;  %914 = vmatprep.subr.bf16.mxu1 %v913_v33  ;;  %v661_v31 = vld [vmem:[#allocation7 + $0x90] sm:$0xff]  ;;  %v662_v33 = vld [vmem:[#allocation7 + $0x98] sm:$0xff]  ;;  %v1063_v34 = vpack.c.bf16 %v644_v26, %v643_v29 }
  0xa6   :  { %1042 = vmatprep.subr.bf16.mxu0 %v1041_v37  ;;  %v1065_v35 = vpack.c.bf16 %v662_v33, %v661_v31  ;;  %v646_v37 = vld [vmem:[#allocation7 + $0x18] sm:$0xff] }
  0xa7   :  { %v1067_v40 = vpack.c.bf16 %v646_v37, %v645_v36 }
  0xa8   :  { %916 = vmatpush1.bf16.msra.mxu1 %v915_v43  ;;  %v648_v43 = vld [vmem:[#allocation7 + $0x28] sm:$0xff] }
  0xa9   :  { %1044 = vmatpush1.bf16.msra.mxu0 %v1043_v11  ;;  %918 = vmatprep.subr.bf16.mxu1 %v917_v44  ;;  %v665_v11 = vld [vmem:[#allocation7 + $0xb0] sm:$0xff]  ;;  %v666_v44 = vld [vmem:[#allocation7 + $0xb8] sm:$0xff]  ;;  %v1071_v45 = vpack.c.bf16 %v648_v43, %v647_v42 }
  0xaa   :  { %1046 = vmatprep.subr.bf16.mxu0 %v1045_v48  ;;  %v1073_v46 = vpack.c.bf16 %v666_v44, %v665_v11  ;;  %v650_v48 = vld [vmem:[#allocation7 + $0x38] sm:$0xff] }
  0xac   :  { %920 = vmatpush1.bf16.msra.mxu1 %v919_v25  ;;  %v670_v25 = vld [vmem:[#allocation7 + $0xd8] sm:$0xff] }
  0xad   :  { %1048 = vmatpush1.bf16.msra.mxu0 %v1047_v54  ;;  %922 = vmatprep.subr.bf16.mxu1 %v921_v55  ;;  %v1079_v54 = vpack.c.bf16 %v652_v52, %v651_v51  ;;  %v1081_v55 = vpack.c.bf16 %v670_v25, %v669_v53 }
  0xae   :  { %1050 = vmatprep.subr.bf16.mxu0 %v1049_v58  ;;  %v672_v58 = vld [vmem:[#allocation7 + $0xe8] sm:$0xff] }
  0xaf   :  { %v1085_v60 = vpack.c.bf16 %v672_v58, %v671_v28 }
  0xb0   :  { %924 = vmatpush1.bf16.msra.mxu1 %v923_v0  ;;  %v673_v0 = vld [vmem:[#allocation7 + $0xf0] sm:$0xff] }
  0xb1   :  { %1052 = vmatpush1.bf16.msra.mxu0 %v1051_v1  ;;  %926 = vmatprep.subr.bf16.mxu1 %v925_v2  ;;  %v674_v1 = vld [vmem:[#allocation7 + $0xf8] sm:$0xff] }
  0xb2   :  { %1054 = vmatprep.subr.bf16.mxu0 %v1053_v6  ;;  %v1089_v2 = vpack.c.bf16 %v674_v1, %v673_v0 }
  0xb4   :  { %928 = vmatpush1.bf16.msra.mxu1 %v927_v13 }
  0xb5   :  { %1056 = vmatpush1.bf16.msra.mxu0 %v1055_v14  ;;  %930 = vmatprep.subr.bf16.mxu1 %v929_v15  ;;  %v769_v14 = vld [vmem:[%s1328_s3] ss:$0 sm:$0xff] }
  0xb6   :  { %1058 = vmatprep.subr.bf16.mxu0 %v1057_v19 }
  0xb8   :  { %932 = vmatpush1.bf16.msra.mxu1 %v931_v24 }
  0xb9   :  { %1060 = vmatpush1.bf16.msra.mxu0 %v1059_v27  ;;  %1062 = vmatprep.subr.bf16.mxu1 %v1061_v22 }
  0xbb   :  { %495 = vmatmul.mubr.f32.vlgmr.msra.gmra.mrb[0].mxu1 %v1297_v30  ;;  %v1075_v30 = vpack.c.bf16 %v650_v48, %v649_v47 }
  0xbc   :  { %637 = vmatmul.mubr.f32.vlgmr.msra.gmra.mrb[0].mxu0 %v1300_v32  ;;  %1064 = vmatpush3.bf16.msra.mxu1 %v1063_v34  ;;  %v1077_v32 = vpack.c.bf16 %v668_v50, %v667_v49 }
  0xbd   :  { %1066 = vmatprep.subr.bf16.mxu1 %v1065_v35 }
  0xc0   :  { %1068 = vmatpush3.bf16.msra.mxu1 %v1067_v40 }
  0xc1   :  { %1070 = vmatprep.subr.bf16.mxu1 %v1069_v41 }
  0xc4   :  { %1072 = vmatpush3.bf16.msra.mxu1 %v1071_v45 }
  0xc5   :  { %1074 = vmatprep.subr.bf16.mxu1 %v1073_v46 }
  0xc8   :  { %1076 = vmatpush3.bf16.msra.mxu1 %v1075_v30 }
  0xc9   :  { %1078 = vmatprep.subr.bf16.mxu1 %v1077_v32 }
  0xcc   :  { %1080 = vmatpush3.bf16.msra.mxu1 %v1079_v54 }
  0xcd   :  { %1082 = vmatprep.subr.bf16.mxu1 %v1081_v55 }
  0xd0   :  { %1084 = vmatpush3.bf16.msra.mxu1 %v1083_v59 }
  0xd1   :  { %1086 = vmatprep.subr.bf16.mxu1 %v1085_v60 }
  0xd4   :  { %1088 = vmatpush3.bf16.msra.mxu1 %v1087_v63 }
  0xd5   :  { %1090 = vmatprep.subr.bf16.mxu1 %v1089_v2 }
  0xd8   :  { %1092 = vmatpush3.bf16.msra.mxu1 %v1091_v5 }
 0x18e   :  { %v496_v6 = vpop.f32.mrb[0].mxu1 }
 0x18f   :  { %v638_v7 = vpop.f32.mrb[0].mxu0  ;;  %v498_v8 = vpop.f32.mrb[1].mxu1 }
 0x190   :  { %v1093_v9 = vadd.f32 %v638_v7, %v496_v6  ;;  %v640_v10 = vpop.f32.mrb[1].mxu0 }
 0x191   :  { %v1094_v12 = vadd.f32 %v640_v10, %v498_v8 }
 0x193   :  { %746 = vmatprep.mubr.f32.mxu1 %v1094_v12 }
 0x194   :  { %747 = vmatmul.mubr.f32.vlgmr.msra.gmra.mrb[2].mxu1 %v1093_v9 }
 0x267   :  { %v802_v13 = vpop.f32.mrb[2].mxu1 }
 0x268   :  { %v803_v15 = vpop.f32.mrb[3].mxu1 }
 0x269   :  { %v804_v16 = vadd.f32 %v803_v15, %v802_v13 }
 0x26b   :  { %v749_v17 = vadd.f32 %v804_v16, %v769_v14 }
 0x26d   :  { %752 = vst [vmem:[#allocation8] sm:$0x3] %v749_v17 }
 0x26e   :  { %1187 = shalt.err (!%p1184_p0)
}
 0x26f   :  { %s1188_s7 = scalar_lea.hbm %s1329_s4, 32 }
 0x270   :  { %p1189_p1 = scmp.ne.s32.totalorder %s1329_s4, %s1188_s7  ;;  %p1192_p2 = scmp.lt.u32.totalorder %s1188_s7, %s1329_s4 }
 0x272   :  { %p1194_p3 = pnand %p1192_p2, %p1189_p1 }
 0x274   :  { %1197 = shalt.err (!%p1194_p3)
}
 0x275   :  { %762 = dma.vmem_to_hbm [thread:$0]  %s760_s29, 32, %s1329_s4, [#allocation4]  }
 0x276   :  { %1202 = dma.done.wait [#allocation4], 32  }
 0x277   :  { %1203 = vsyncadd [#allocation4], 4294967264 }
 0x278   :  { %766 = vsyncpa [#allocation3], 1 }
 0x279   :  { %767 = vsyncpa [#allocation6], 1 }
 0x27a   :  { %768 = vsyncpa [#allocation4], 1 }

</bundles_post_ra>
